<compile_context>
chip_gen: v7x
topology: tpu7x:2x2x1
jax: 0.10.0
libtpu: 0.0.40
codegen_flags: <defaults>
</compile_context>

<pallas_src>
import functools

import jax
import jax.numpy as jnp
from jax import lax
from jax.experimental import pallas as pl
from jax.experimental.pallas import tpu as pltpu

NUM_EMBEDDINGS = 64     # codebook size (num_embeddings)
EMBEDDING_DIM = 32      # embedding_dim (== channel dim D of the encoder output)
COMMITMENT_COST = 0.25  # beta


def _vq_kernel(x_ref, cb_ref, cbt_ref, e2h_ref, codes_ref, q_ref, sse_ref):
    """One (batch, spatial-tile) block in native NCHW layout.

    x_ref:     (1, D, tl) f32   encoder vectors, D on sublanes, spatial on lanes
    cb_ref:    (N, D)     f32   codebook
    cbt_ref:   (D, N)     f32   codebook transposed (precomputed in wrapper)
    e2h_ref:   (N, 1)     f32   0.5 * ||cb_k||^2 (precomputed in wrapper)
    codes_ref: (1, 1, tl) i32   nearest-code indices (lane-dense)
    q_ref:     (1, D, tl) f32   quantized vectors
    sse_ref:   (1, 1, tl) f32   per-column sum over D of (q - x)^2
    """
    x = x_ref[0]                 # (D, tl)
    cb = cb_ref[...]             # (N, D)
    cbt = cbt_ref[...]           # (D, N)
    e2h = e2h_ref[...]           # (N, 1) = 0.5 * ||e_k||^2
    n = cb.shape[0]
    tl = x.shape[1]

    # Distance proxy: argmin_k ||x - e_k||^2 == argmin_k (0.5*||e_k||^2 - e_k.x)
    # (the per-column ||x||^2 constant is dropped).
    dots = jnp.dot(cb, x, preferred_element_type=jnp.float32)     # (N, tl) MXU
    d = e2h - dots                                                # (N, tl)

    # argmin over the codebook (sublane) axis, ties -> smallest index
    # (matches torch.argmin tie-breaking).
    iota = lax.broadcasted_iota(jnp.int32, (n, tl), 0)
    d_min = jnp.min(d, axis=0, keepdims=True)                     # (1, tl) XLU
    codes = jnp.min(jnp.where(d <= d_min, iota, n), axis=0).astype(jnp.int32)
    codes_ref[...] = codes[None, None, :]

    # Gather selected codebook rows as a one-hot matmul: (D,N)x(N,tl)->(D,tl).
    onehot = (iota == codes[None, :]).astype(jnp.float32)         # (N, tl)
    q = jnp.dot(cbt, onehot, preferred_element_type=jnp.float32)  # (D, tl) MXU
    q_ref[...] = q[None]

    # Per-column SSE partial (lane-dense); the mean is finished in the wrapper,
    # which keeps the grid free of cross-step dependencies.
    diff = q - x
    sse_ref[...] = jnp.sum(diff * diff, axis=0, keepdims=True)[None]


@functools.partial(jax.jit, static_argnames=("tl",))
def vector_quantize(x_bdhw, codebook, tl=2048):
    """Forward pass of the vector quantizer (NCHW in / NCHW out).

    x_bdhw:   (B, D, H, W) float32  (NCHW, like the PyTorch encoder output)
    codebook: (N, D)        float32
    tl:       spatial lane-tile (multiple of 128), sweepable.
    returns:  quantized (B, D, H, W), codes (B, H*W) int32, latent_loss scalar
    """
    assert tl % 128 == 0, "spatial tile must be a multiple of 128 lanes"
    B, D, H, W = x_bdhw.shape
    N = codebook.shape[0]
    hw = H * W

    # Native NCHW: only a free reshape, no transposes (no extra HBM traffic).
    x_flat = x_bdhw.reshape(B, D, hw).astype(jnp.float32)
    cb = codebook.astype(jnp.float32)
    cbt = cb.T                                                  # (D, N), tiny
    e2_half = 0.5 * jnp.sum(cb * cb, axis=-1, keepdims=True)    # (N, 1), once

    # Pad the spatial axis to a multiple of the lane tile (tail handling).
    hw_128 = ((hw + 127) // 128) * 128
    tl_eff = min(tl, hw_128)
    n_j = pl.cdiv(hw, tl_eff)
    hw_pad = n_j * tl_eff
    if hw_pad != hw:
        x_flat = jnp.pad(x_flat, ((0, 0), (0, 0), (0, hw_pad - hw)))

    codes_p, q_p, sse_p = pl.pallas_call(
        _vq_kernel,
        out_shape=(
            jax.ShapeDtypeStruct((B, 1, hw_pad), jnp.int32),
            jax.ShapeDtypeStruct((B, D, hw_pad), jnp.float32),
            jax.ShapeDtypeStruct((B, 1, hw_pad), jnp.float32),
        ),
        grid_spec=pltpu.PrefetchScalarGridSpec(
            num_scalar_prefetch=0,
            grid=(B, n_j),
            in_specs=[
                pl.BlockSpec((1, D, tl_eff), lambda b, j: (b, 0, j)),  # x tile
                pl.BlockSpec((N, D), lambda b, j: (0, 0)),             # codebook
                pl.BlockSpec((D, N), lambda b, j: (0, 0)),             # codebook^T
                pl.BlockSpec((N, 1), lambda b, j: (0, 0)),             # 0.5*||e||^2
            ],
            out_specs=(
                pl.BlockSpec((1, 1, tl_eff), lambda b, j: (b, 0, j)),  # codes
                pl.BlockSpec((1, D, tl_eff), lambda b, j: (b, 0, j)),  # quantized
                pl.BlockSpec((1, 1, tl_eff), lambda b, j: (b, 0, j)),  # SSE partials
            ),
        ),
        compiler_params=pltpu.CompilerParams(
            dimension_semantics=("parallel", "parallel")),
    )(x_flat, cb, cbt, e2_half)

    quantized = q_p[:, :, :hw].reshape(B, D, H, W)
    codes = codes_p[:, 0, :hw]
    mse = jnp.sum(sse_p[:, 0, :hw]) / (B * hw * D)
    # codebook loss + beta * commitment loss (identical forward value).
    latent_loss = mse + COMMITMENT_COST * mse
    return quantized, codes, latent_loss


def _check(x_bdhw, codebook, quantized, codes, latent_loss):
    """Pure-JAX verification; tolerant only to genuine floating-point near-ties."""
    B, D, H, W = x_bdhw.shape
    hw = H * W
    assert quantized.shape == x_bdhw.shape
    assert codes.shape == (B, hw)

    flat = jnp.transpose(x_bdhw, (0, 2, 3, 1)).reshape(-1, D)           # (M, D)
    e2 = jnp.sum(codebook ** 2, axis=-1)                                # (N,)
    dots = jnp.dot(flat, codebook.T, precision=lax.Precision.HIGHEST)   # (M, N)
    d = 0.5 * e2[None, :] - dots                                        # (M, N)
    ref_codes = jnp.argmin(d, axis=-1).astype(jnp.int32)

    codes_flat = codes.reshape(-1)
    # Every selected code must be (near-)optimal; indices may differ from the
    # reference only on floating-point near-ties.
    picked = jnp.take_along_axis(d, codes_flat[:, None], axis=1)[:, 0]
    best = jnp.min(d, axis=-1)
    assert bool(jnp.all(picked - best <= 1e-4)), "non-optimal code selected"
    assert float(jnp.mean((codes_flat == ref_codes).astype(jnp.float32))) >= 0.99, \
        "too many code index mismatches"

    # Quantized output must be exactly the gathered codebook rows (own codes).
    q_flat = jnp.transpose(quantized, (0, 2, 3, 1)).reshape(-1, D)
    assert bool(jnp.allclose(q_flat, codebook[codes_flat], atol=1e-5)), \
        "quantized gather mismatch"

    # Loss vs (1 + beta) * mse using the kernel's own codes (exact check of the
    # SSE accumulation) and vs the pure reference (tolerant to near-tie flips).
    mse_own = jnp.mean((codebook[codes_flat] - flat) ** 2)
    assert bool(jnp.allclose(latent_loss, (1.0 + COMMITMENT_COST) * mse_own,
                             rtol=1e-4, atol=1e-6)), "loss mismatch (own codes)"
    mse_ref = jnp.mean((codebook[ref_codes] - flat) ** 2)
    assert bool(jnp.allclose(latent_loss, (1.0 + COMMITMENT_COST) * mse_ref,
                             rtol=1e-3, atol=1e-5)), "loss mismatch (reference)"


if __name__ == "__main__":
    key = jax.random.PRNGKey(0)
    k_x, k_cb, k_x2 = jax.random.split(key, 3)

    B, D, H, W = 2, EMBEDDING_DIM, 16, 16
    x = jax.random.normal(k_x, (B, D, H, W), dtype=jnp.float32)

    # nn.Embedding weight, init_codebook(): uniform(-1/N, 1/N)
    codebook = jax.random.uniform(
        k_cb, (NUM_EMBEDDINGS, EMBEDDING_DIM),
        minval=-1.0 / NUM_EMBEDDINGS, maxval=1.0 / NUM_EMBEDDINGS,
        dtype=jnp.float32)

    quantized, codes, latent_loss = vector_quantize(x, codebook)
    jax.block_until_ready((quantized, codes, latent_loss))
    _check(x, codebook, quantized, codes, latent_loss)

    # Second case exercises the non-multiple-of-128 spatial tail (zero padding)
    # and a multi-tile grid along the spatial axis.
    x2 = jax.random.normal(k_x2, (1, EMBEDDING_DIM, 20, 20), dtype=jnp.float32)
    q2, c2, l2 = vector_quantize(x2, codebook, tl=128)
    jax.block_until_ready((q2, c2, l2))
    _check(x2, codebook, q2, c2, l2)

    # TODO(synk): get_codebook_usage / reinit_unused_codes are host-side
    # bookkeeping (multinomial resampling) and are left in plain JAX/NumPy.
    print("KERNEL_OK")
</pallas_src>

<mosaic_0001>
module attributes {stable_mosaic.version = 11 : i64} {
  func.func @_vq_kernel(%arg0: i32, %arg1: i32, %arg2: memref<1x32x256xf32, #tpu.memory_space<vmem>>, %arg3: memref<64x32xf32, #tpu.memory_space<vmem>>, %arg4: memref<32x64xf32, #tpu.memory_space<vmem>>, %arg5: memref<64x1xf32, #tpu.memory_space<vmem>>, %arg6: memref<1x1x256xi32, #tpu.memory_space<vmem>>, %arg7: memref<1x32x256xf32, #tpu.memory_space<vmem>>, %arg8: memref<1x1x256xf32, #tpu.memory_space<vmem>>) attributes {dimension_semantics = [#tpu.dimension_semantics<parallel>, #tpu.dimension_semantics<parallel>], iteration_bounds = array<i64: 2, 1>, scalar_prefetch = 0 : i64, scratch_operands = 0 : i64, tpu.core_type = #tpu.core_type<tc>, window_params = [{transform_indices = @transform_0, window_bounds = array<i64: 1, 32, 256>}, {pipeline_mode = #tpu.pipeline_mode<synchronous>, transform_indices = @transform_1, window_bounds = array<i64: 64, 32>}, {pipeline_mode = #tpu.pipeline_mode<synchronous>, transform_indices = @transform_2, window_bounds = array<i64: 32, 64>}, {pipeline_mode = #tpu.pipeline_mode<synchronous>, transform_indices = @transform_3, window_bounds = array<i64: 64, 1>}, {transform_indices = @transform_4, window_bounds = array<i64: 1, 1, 256>}, {transform_indices = @transform_5, window_bounds = array<i64: 1, 32, 256>}, {transform_indices = @transform_6, window_bounds = array<i64: 1, 1, 256>}]} {
    %c0 = arith.constant 0 : index
    %c0_0 = arith.constant 0 : index
    %c0_1 = arith.constant 0 : index
    %0 = vector.load %arg2[%c0, %c0_0, %c0_1] : memref<1x32x256xf32, #tpu.memory_space<vmem>>, vector<1x32x256xf32>
    %1 = vector.shape_cast %0 : vector<1x32x256xf32> to vector<32x256xf32>
    %c0_2 = arith.constant 0 : index
    %c0_3 = arith.constant 0 : index
    %2 = vector.load %arg3[%c0_2, %c0_3] : memref<64x32xf32, #tpu.memory_space<vmem>>, vector<64x32xf32>
    %c0_4 = arith.constant 0 : index
    %c0_5 = arith.constant 0 : index
    %3 = vector.load %arg4[%c0_4, %c0_5] : memref<32x64xf32, #tpu.memory_space<vmem>>, vector<32x64xf32>
    %c0_6 = arith.constant 0 : index
    %c0_7 = arith.constant 0 : index
    %4 = vector.load %arg5[%c0_6, %c0_7] : memref<64x1xf32, #tpu.memory_space<vmem>>, vector<64x1xf32>
    %cst = arith.constant dense<0.000000e+00> : vector<64x256xf32>
    %5 = tpu.matmul %2, %1, %cst {dimension_numbers = #tpu.dot_dimension_numbers<[1], [0], [0], [1], [0, 0, 1, 1], [], []>} : vector<64x32xf32>, vector<32x256xf32>, vector<64x256xf32> -> vector<64x256xf32>
    %6 = vector.broadcast %4 : vector<64x1xf32> to vector<64x256xf32>
    %7 = arith.subf %6, %5 : vector<64x256xf32>
    %8 = tpu.iota {dimensions = array<i32: 0>} : vector<64x256xi32>
    %cst_8 = arith.constant dense<0x7F800000> : vector<256xf32>
    %9 = vector.multi_reduction <minimumf>, %7, %cst_8 [0] : vector<64x256xf32> to vector<256xf32>
    %10 = vector.shape_cast %9 : vector<256xf32> to vector<1x256xf32>
    %11 = vector.broadcast %10 : vector<1x256xf32> to vector<64x256xf32>
    %12 = arith.cmpf ole, %7, %11 : vector<64x256xf32>
    %c64_i32 = arith.constant 64 : i32
    %13 = vector.broadcast %c64_i32 : i32 to vector<64x256xi32>
    %14 = arith.select %12, %8, %13 : vector<64x256xi1>, vector<64x256xi32>
    %cst_9 = arith.constant dense<2147483647> : vector<256xi32>
    %15 = vector.multi_reduction <minsi>, %14, %cst_9 [0] : vector<64x256xi32> to vector<256xi32>
    %16 = vector.shape_cast %15 : vector<256xi32> to vector<1x1x256xi32>
    %c0_10 = arith.constant 0 : index
    %c0_11 = arith.constant 0 : index
    %c0_12 = arith.constant 0 : index
    %17 = vector.load %arg6[%c0_10, %c0_11, %c0_12] : memref<1x1x256xi32, #tpu.memory_space<vmem>>, vector<1x1x256xi32>
    tpu.vector_store %arg6[%c0_10, %c0_11, %c0_12], %16 {strides = array<i32>} : memref<1x1x256xi32, #tpu.memory_space<vmem>>, vector<1x1x256xi32>,
    %18 = vector.shape_cast %15 : vector<256xi32> to vector<1x256xi32>
    %19 = vector.broadcast %18 : vector<1x256xi32> to vector<64x256xi32>
    %20 = arith.cmpi eq, %8, %19 : vector<64x256xi32>
    %21 = arith.extui %20 : vector<64x256xi1> to vector<64x256xi32>
    %22 = arith.sitofp %21 : vector<64x256xi32> to vector<64x256xf32>
    %cst_13 = arith.constant dense<0.000000e+00> : vector<32x256xf32>
    %23 = tpu.matmul %3, %22, %cst_13 {dimension_numbers = #tpu.dot_dimension_numbers<[1], [0], [0], [1], [0, 0, 1, 1], [], []>} : vector<32x64xf32>, vector<64x256xf32>, vector<32x256xf32> -> vector<32x256xf32>
    %24 = vector.shape_cast %23 : vector<32x256xf32> to vector<1x32x256xf32>
    %c0_14 = arith.constant 0 : index
    %c0_15 = arith.constant 0 : index
    %c0_16 = arith.constant 0 : index
    %25 = vector.load %arg7[%c0_14, %c0_15, %c0_16] : memref<1x32x256xf32, #tpu.memory_space<vmem>>, vector<1x32x256xf32>
    tpu.vector_store %arg7[%c0_14, %c0_15, %c0_16], %24 {strides = array<i32>} : memref<1x32x256xf32, #tpu.memory_space<vmem>>, vector<1x32x256xf32>,
    %26 = arith.subf %23, %1 : vector<32x256xf32>
    %27 = arith.mulf %26, %26 : vector<32x256xf32>
    %cst_17 = arith.constant dense<0.000000e+00> : vector<256xf32>
    %28 = vector.multi_reduction <add>, %27, %cst_17 [0] : vector<32x256xf32> to vector<256xf32>
    %29 = vector.shape_cast %28 : vector<256xf32> to vector<1x256xf32>
    %30 = vector.shape_cast %29 : vector<1x256xf32> to vector<1x1x256xf32>
    %c0_18 = arith.constant 0 : index
    %c0_19 = arith.constant 0 : index
    %c0_20 = arith.constant 0 : index
    %31 = vector.load %arg8[%c0_18, %c0_19, %c0_20] : memref<1x1x256xf32, #tpu.memory_space<vmem>>, vector<1x1x256xf32>
    tpu.vector_store %arg8[%c0_18, %c0_19, %c0_20], %30 {strides = array<i32>} : memref<1x1x256xf32, #tpu.memory_space<vmem>>, vector<1x1x256xf32>,
    return
  }
  func.func @transform_0(%arg0: i32, %arg1: i32) -> (i32, i32, i32) {
    %c0_i32 = arith.constant 0 : i32
    %c0_i32_0 = arith.constant 0 : i32
    return %arg0, %c0_i32, %arg1 : i32, i32, i32
  }
  func.func @transform_1(%arg0: i32, %arg1: i32) -> (i32, i32) {
    %c0_i32 = arith.constant 0 : i32
    %c0_i32_0 = arith.constant 0 : i32
    %c0_i32_1 = arith.constant 0 : i32
    return %c0_i32, %c0_i32_0 : i32, i32
  }
  func.func @transform_2(%arg0: i32, %arg1: i32) -> (i32, i32) {
    %c0_i32 = arith.constant 0 : i32
    %c0_i32_0 = arith.constant 0 : i32
    %c0_i32_1 = arith.constant 0 : i32
    return %c0_i32, %c0_i32_0 : i32, i32
  }
  func.func @transform_3(%arg0: i32, %arg1: i32) -> (i32, i32) {
    %c0_i32 = arith.constant 0 : i32
    %c0_i32_0 = arith.constant 0 : i32
    %c0_i32_1 = arith.constant 0 : i32
    return %c0_i32, %c0_i32_0 : i32, i32
  }
  func.func @transform_4(%arg0: i32, %arg1: i32) -> (i32, i32, i32) {
    %c0_i32 = arith.constant 0 : i32
    %c0_i32_0 = arith.constant 0 : i32
    return %arg0, %c0_i32, %arg1 : i32, i32, i32
  }
  func.func @transform_5(%arg0: i32, %arg1: i32) -> (i32, i32, i32) {
    %c0_i32 = arith.constant 0 : i32
    %c0_i32_0 = arith.constant 0 : i32
    return %arg0, %c0_i32, %arg1 : i32, i32, i32
  }
  func.func @transform_6(%arg0: i32, %arg1: i32) -> (i32, i32, i32) {
    %c0_i32 = arith.constant 0 : i32
    %c0_i32_0 = arith.constant 0 : i32
    return %arg0, %c0_i32, %arg1 : i32, i32, i32
  }
}

</mosaic_0001>

<bundles_post_ra>
// kernel: vector_quantize.1
= control target key start
LH: loop header
LB: loop body
LE: loop exit
PB: predicated region body
PF: predicated region fallthrough
CT: control target
= control target key end

     0   :  { %s1251_s21 = smov 0   ;;  %s1253_s22 = smov 0   ;;  %s1560_s0 = inlined_call_operand.vmem [shape: f32[2,32,256], index: 0, kind: input, shape index: {}]   ;;  %s1561_s1 = inlined_call_operand.vmem [shape: f32[64,32], index: 1, kind: input, shape index: {}]   ;;  %s1562_s2 = inlined_call_operand.vmem [shape: f32[32,64], index: 2, kind: input, shape index: {}]   ;;  %s1563_s3 = inlined_call_operand.vmem [shape: f32[64,1], index: 3, kind: input, shape index: {}]   ;;  %s1564_s4 = inlined_call_operand.vmem [shape: s32[2,1,256], index: 4, kind: output, shape index: {0}]   ;;  %s1565_s5 = inlined_call_operand.vmem [shape: f32[2,32,256], index: 5, kind: output, shape index: {1}]   ;;  %s1566_s6 = inlined_call_operand.vmem [shape: f32[2,1,256], index: 6, kind: output, shape index: {2}]  }
   0x1   :  { %s1255_s23 = smov 0  }
   0x2 LB: > { %s29_s24 = sadd.s32 1, %s1206_s22  ;;  %p1079_p0 = scmp.ge.s32.totalorder %s1210_s23, 1  ;;  %s1210_s23 = sphi %s1255_s23, %s17_s23   ;;  %s1206_s22 = sphi %s1253_s22, %s1570_s22   ;;  %s1202_s21 = sphi %s1251_s21, %s1569_s21  }
   0x3   : > { %p31_p1 = scmp.ge.s32.totalorder %s29_s24, 2  ;;  %p242_p2 = scmp.lt.s32.totalorder %s1210_s23, 3 }
   0x5   : > { %s1572_s24 = smov (%p31_p1, %s29_s24), 0  ;;  %p243_p3 = pnand %p1079_p0, %p242_p2 }
   0x6   : > { %p297_p4 = scmp.lt.s32.totalorder (!%p243_p3), %s1202_s21, 1  ;;  %v1212_v0 = vmov (!%p243_p3), 0.0   ;;  %v1213_v1 = vmov (!%p243_p3), 0   ;;  %v354_v2 = vld [vmem:[%s1563_s3] sm:$0xff] (!%p243_p3)  ;;  %v356_v3 = vld [vmem:[%s1563_s3 + $0x10] sm:$0xff] (!%p243_p3)  ;;  %v355_v4 = vld [vmem:[%s1563_s3 + $0x8] sm:$0xff] (!%p243_p3) }
   0x7   : > { %246 = sbr.rel (%p243_p3) target bundleno = 584 (0x248), region = 36  ;;  %451 = vmatprep.mubr.f32.mxu0 (!%p243_p3), %v1212_v0  ;;  %814 = vmatprep.mubr.f32.mxu1 (!%p243_p3), %v1212_v0  ;;  %v357_v5 = vld [vmem:[%s1563_s3 + $0x18] sm:$0xff] (!%p243_p3)  ;;  %v358_v17 = vld [vmem:[%s1563_s3 + $0x20] sm:$0xff] (!%p243_p3)  ;;  %v359_v18 = vld [vmem:[%s1563_s3 + $0x28] sm:$0xff] (!%p243_p3)  ;;  %vm362_vm0 = vcmask (!%p243_p3), 261120  }
   0x8   : > { %1186 = vset.pattern.permute.xlu0 (!%p243_p3), %v1213_v1  ;;  %1187 = vset.pattern.permute.xlu1 (!%p243_p3), %v1213_v1  ;;  %v360_v20 = vld [vmem:[%s1563_s3 + $0x30] sm:$0xff] (!%p243_p3)  ;;  %v361_v21 = vld [vmem:[%s1563_s3 + $0x38] sm:$0xff] (!%p243_p3)  ;;  %v342_v22 = vld [vmem:[%s1561_s1] sm:$0xff] (!%p243_p3) }
   0x9   : > { %502 = vperm.xlu0 (!%p243_p3), %1186, %v354_v2   ;;  %512 = vperm.xlu1 (!%p243_p3), %1187, %v356_v3   ;;  %v343_v23 = vld [vmem:[%s1561_s1 + $0x8] sm:$0xff] (!%p243_p3)  ;;  %v344_v24 = vld [vmem:[%s1561_s1 + $0x10] sm:$0xff] (!%p243_p3)  ;;  %v345_v25 = vld [vmem:[%s1561_s1 + $0x18] sm:$0xff] (!%p243_p3) }
   0xa   : > { %v346_v26 = vld [vmem:[%s1561_s1 + $0x20] sm:$0xff] (!%p243_p3)  ;;  %v347_v27 = vld [vmem:[%s1561_s1 + $0x28] sm:$0xff] (!%p243_p3)  ;;  %v348_v28 = vld [vmem:[%s1561_s1 + $0x30] sm:$0xff] (!%p243_p3) }
   0xb   : > { %v349_v29 = vld [vmem:[%s1561_s1 + $0x38] sm:$0xff] (!%p243_p3) }
   0xd   : > { %507 = vperm.xlu0 (!%p243_p3), %1186, %v355_v4   ;;  %517 = vperm.xlu1 (!%p243_p3), %1187, %v357_v5  }
   0xe   : > { %s1574_s21 = smov (!%p297_p4, %s1202_s21), 1 }
   0xf   : > { %s1132_s29 = sshll.u32 %s1574_s21, 6  ;;  %s1082_s18 = sshll.u32 %s1574_s21, 1 }
  0x10   : > { %s304_s10 = scalar_lea.vmem %s1560_s0, %s1132_s29  ;;  %s313_s25 = scalar_lea.vmem %s1564_s4, %s1082_s18 }
  0x11   : > { %v1291_v6 = vld [vmem:[%s304_s10 + $0x8] sm:$0xff]  ;;  %v1293_v7 = vld [vmem:[%s304_s10 + $0x18] sm:$0xff]  ;;  %v1295_v8 = vld [vmem:[%s304_s10] sm:$0xff]  ;;  %522 = vperm.xlu0 %1186, %v358_v17   ;;  %527 = vperm.xlu1 %1187, %v359_v18   ;;  %s1524_s13 = scalar_lea.vmem %s1565_s5, %s1132_s29  ;;  %s332_s15 = scalar_lea.vmem %s1566_s6, %s1082_s18 }
  0x12   : > { %v1134_v9 = vpack.c.bf16 %v1293_v7, %v1291_v6  ;;  %v1299_v10 = vld [vmem:[%s304_s10 + $0x10] sm:$0xff]  ;;  %v1301_v11 = vld [vmem:[%s304_s10 + $0x28] sm:$0xff]  ;;  %v1303_v12 = vld [vmem:[%s304_s10 + $0x38] sm:$0xff] }
  0x13   : > { %v1136_v13 = vpack.c.bf16 %v1299_v10, %v1295_v8  ;;  %v1138_v14 = vpack.c.bf16 %v1303_v12, %v1301_v11  ;;  %v1309_v15 = vld [vmem:[%s304_s10 + $0x20] sm:$0xff]  ;;  %v1311_v16 = vld [vmem:[%s304_s10 + $0x30] sm:$0xff] }
  0x14   : > { %1135 = vmatprep.subr.bf16.mxu0 %v1134_v9  ;;  %v1140_v19 = vpack.c.bf16 %v1311_v16, %v1309_v15 }
  0x15   : > { %1137 = vmatpush1.bf16.msra.mxu0 %v1136_v13  ;;  %532 = vperm.xlu0 %1186, %v360_v20  }
  0x16   : > { %1139 = vmatprep.subr.bf16.mxu0 %v1138_v14  ;;  %537 = vperm.xlu1 %1187, %v361_v21  }
  0x19   : > { %1141 = vmatpush1.bf16.msra.mxu0 %v1140_v19 }
  0x1c   : > { %1086 = vmatmul.mubr.msk.f32.vlgmr.msra.gmra.mrb[0].mxu0 %vm362_vm0, %v342_v22 }
  0x1d   : > { %457 = vmatprep.mubr.f32.mxu0 %v1212_v0 }
  0x20   : > { %1087 = vmatmul.mubr.msk.f32.gmra.mrb[2].mxu0 %vm362_vm0, %v343_v23 }
  0x21   : > { %463 = vmatprep.mubr.f32.mxu0 %v1212_v0 }
  0x24   : > { %1088 = vmatmul.mubr.msk.f32.gmra.mrb[4].mxu0 %vm362_vm0, %v344_v24 }
  0x25   : > { %469 = vmatprep.mubr.f32.mxu0 %v1212_v0 }
  0x28   : > { %1089 = vmatmul.mubr.msk.f32.gmra.mrb[6].mxu0 %vm362_vm0, %v345_v25 }
  0x29   : > { %475 = vmatprep.mubr.f32.mxu0 %v1212_v0 }
  0x2c   : > { %1090 = vmatmul.mubr.msk.f32.gmra.mrb[8].mxu0 %vm362_vm0, %v346_v26 }
  0x2d   : > { %481 = vmatprep.mubr.f32.mxu0 %v1212_v0 }
  0x30   : > { %1091 = vmatmul.mubr.msk.f32.gmra.mrb[10].mxu0 %vm362_vm0, %v347_v27 }
  0x31   : > { %487 = vmatprep.mubr.f32.mxu0 %v1212_v0 }
  0x34   : > { %1092 = vmatmul.mubr.msk.f32.gmra.mrb[12].mxu0 %vm362_vm0, %v348_v28 }
  0x35   : > { %493 = vmatprep.mubr.f32.mxu0 %v1212_v0 }
  0x38   : > { %1093 = vmatmul.mubr.msk.f32.gmra.mrb[14].mxu0 %vm362_vm0, %v349_v29 }
  0x88   : > { %v503_v32 = vpop.permute.xlu0 %502  ;;  %v513_v35 = vpop.permute.xlu1 %512 }
  0x8c   : > { %v508_v41 = vpop.permute.xlu0 %507  ;;  %v518_v44 = vpop.permute.xlu1 %517 }
  0x90   : > { %v523_v53 = vpop.permute.xlu0 %522  ;;  %v528_v60 = vpop.permute.xlu1 %527 }
  0x94   : > { %v533_v4 = vpop.permute.xlu0 %532 }
  0x95   : > { %v538_v19 = vpop.permute.xlu1 %537 }
  0xef   : > { %v453_v30 = vpop.f32.mrb[0].mxu0 }
  0xf0   : > { %v455_v31 = vpop.f32.mrb[1].mxu0  ;;  %v1366_v37 = vsub.f32 %v503_v32, %v453_v30  ;;  %v556_v30 = vlaneseq }
  0xf1   : > { %v1370_v40 = vsub.f32 %v503_v32, %v455_v31 }
  0xf3   : > { %v459_v33 = vpop.f32.mrb[2].mxu0 }
  0xf4   : > { %v461_v34 = vpop.f32.mrb[3].mxu0  ;;  %v1378_v47 = vsub.f32 %v508_v41, %v459_v33 }
  0xf5   : > { %v1382_v50 = vsub.f32 %v508_v41, %v461_v34 }
  0xf7   : > { %v465_v36 = vpop.f32.mrb[4].mxu0 }
  0xf8   : > { %v1368_v38 = vsub.f32 %v513_v35, %v465_v36  ;;  %v467_v39 = vpop.f32.mrb[5].mxu0 }
  0xf9   : > { %v1372_v42 = vsub.f32 %v513_v35, %v467_v39  ;;  %v1403_v35 = vshrl.u32 %v556_v30, 7 }
  0xfa   : > { %v565_v43 = vmin.f32 %v1366_v37, %v1368_v38 }
  0xfb   : > { %v578_v45 = vmin.f32 %v1370_v40, %v1372_v42  ;;  %v471_v46 = vpop.f32.mrb[6].mxu0 }
  0xfc   : > { %v1380_v48 = vsub.f32 %v518_v44, %v471_v46  ;;  %v473_v49 = vpop.f32.mrb[7].mxu0  ;;  %v1409_v46 = vadd.s32 16, %v1403_v35 }
  0xfd   : > { %v1384_v51 = vsub.f32 %v518_v44, %v473_v49  ;;  %v1406_v44 = vadd.s32 8, %v1403_v35  ;;  %v1412_v49 = vadd.s32 24, %v1403_v35 }
  0xfe   : > { %v566_v52 = vmin.f32 %v1378_v47, %v1380_v48 }
  0xff   : > { %v579_v54 = vmin.f32 %v1382_v50, %v1384_v51  ;;  %v477_v55 = vpop.f32.mrb[8].mxu0 }
 0x100   : > { %v548_v56 = vsub.f32 %v523_v53, %v477_v55  ;;  %v479_v57 = vpop.f32.mrb[9].mxu0  ;;  %v1421_v55 = vadd.s32 48, %v1403_v35 }
 0x101   : > { %v1390_v58 = vsub.f32 %v523_v53, %v479_v57  ;;  %v1424_v57 = vadd.s32 56, %v1403_v35 }
 0x102   : > { %v567_v59 = vmin.f32 %v565_v43, %v548_v56 }
 0x103   : > { %v580_v61 = vmin.f32 %v578_v45, %v1390_v58  ;;  %v483_v62 = vpop.f32.mrb[10].mxu0 }
 0x104   : > { %v550_v63 = vsub.f32 %v528_v60, %v483_v62  ;;  %v485_v1 = vpop.f32.mrb[11].mxu0 }
 0x105   : > { %v1393_v2 = vsub.f32 %v528_v60, %v485_v1 }
 0x106   : > { %v568_v3 = vmin.f32 %v566_v52, %v550_v63  ;;  %v1415_v52 = vadd.s32 32, %v1403_v35 }
 0x107   : > { %v581_v5 = vmin.f32 %v579_v54, %v1393_v2  ;;  %v489_v9 = vpop.f32.mrb[12].mxu0  ;;  %v1418_v54 = vadd.s32 40, %v1403_v35 }
 0x108   : > { %v552_v13 = vsub.f32 %v533_v4, %v489_v9  ;;  %v491_v14 = vpop.f32.mrb[13].mxu0 }
 0x109   : > { %v1396_v17 = vsub.f32 %v533_v4, %v491_v14 }
 0x10a   : > { %v569_v18 = vmin.f32 %v567_v59, %v552_v13 }
 0x10b   : > { %v582_v20 = vmin.f32 %v580_v61, %v1396_v17  ;;  %v495_v21 = vpop.f32.mrb[14].mxu0 }
 0x10c   : > { %v554_v22 = vsub.f32 %v538_v19, %v495_v21  ;;  %v497_v23 = vpop.f32.mrb[15].mxu0 }
 0x10d   : > { %v1399_v24 = vsub.f32 %v538_v19, %v497_v23 }
 0x10e   : > { %v570_v25 = vmin.f32 %v568_v3, %v554_v22 }
 0x10f   : > { %v583_v26 = vmin.f32 %v581_v5, %v1399_v24 }
 0x110   : > { %v571_v27 = vmin.f32 %v569_v18, %v570_v25 }
 0x111   : > { %v584_v28 = vmin.f32 %v582_v20, %v583_v26 }
 0x112   : > { %v572_v29 = vrot.slane %v571_v27, 4 }
 0x113   : > { %v585_v31 = vrot.slane %v584_v28, 4 }
 0x114   : > { %v573_v32 = vmin.f32 %v571_v27, %v572_v29 }
 0x115   : > { %v586_v33 = vmin.f32 %v584_v28, %v585_v31 }
 0x116   : > { %v574_v34 = vrot.slane %v573_v32, 2 }
 0x117   : > { %v587_v36 = vrot.slane %v586_v33, 2 }
 0x118   : > { %v575_v39 = vmin.f32 %v573_v32, %v574_v34  ;;  %v1214_v34 = vmov 1966171168  }
 0x119   : > { %v588_v41 = vmin.f32 %v586_v33, %v587_v36  ;;  %v671_v36 = vunpack.c.l.s4 %v1214_v34 }
 0x11a   : > { %v576_v43 = vrot.slane %v575_v39, 1 }
 0x11b   : > { %v589_v45 = vrot.slane %v588_v41, 1 }
 0x11c   : > { %v577_v53 = vmin.f32 %v575_v39, %v576_v43 }
 0x11d   : > { %v590_v59 = vmin.f32 %v588_v41, %v589_v45  ;;  %v672_v41 = vunpack.c.0.s8 %v671_v36 }
 0x11e   : > { %vm591_vm1 = vcmp.le.f32.partialorder %v1366_v37, %v577_v53  ;;  %vm593_vm2 = vcmp.le.f32.partialorder %v1378_v47, %v577_v53  ;;  %vm595_vm3 = vcmp.le.f32.partialorder %v1368_v38, %v577_v53  ;;  %vm597_vm4 = vcmp.le.f32.partialorder %v1380_v48, %v577_v53 }
 0x11f   : > { %vm599_vm5 = vcmp.le.f32.partialorder %v548_v56, %v577_v53  ;;  %vm601_vm6 = vcmp.le.f32.partialorder %v550_v63, %v577_v53  ;;  %vm603_vm7 = vcmp.le.f32.partialorder %v552_v13, %v577_v53  ;;  %vm605_vm8 = vcmp.le.f32.partialorder %v554_v22, %v577_v53 }
 0x120   : > { %v607_v60 = vsel %vm591_vm1, %v1403_v35, 64  ;;  %v609_v61 = vsel %vm593_vm2, %v1406_v44, 64  ;;  %v611_v62 = vsel %vm595_vm3, %v1409_v46, 64  ;;  %v613_v1 = vsel %vm597_vm4, %v1412_v49, 64 }
 0x121   : > { %v615_v37 = vsel %vm599_vm5, %v1415_v52, 64  ;;  %v617_v47 = vsel %vm601_vm6, %v1418_v54, 64  ;;  %v619_v38 = vsel %vm603_vm7, %v1421_v55, 64  ;;  %v621_v48 = vsel %vm605_vm8, %v1424_v57, 64 }
 0x122   : > { %vm623_vm9 = vcmp.lt.s32.totalorder %v607_v60, %v611_v62  ;;  %vm625_vm10 = vcmp.lt.s32.totalorder %v609_v61, %v613_v1  ;;  %vm592_vm11 = vcmp.le.f32.partialorder %v1370_v40, %v590_v59  ;;  %vm594_vm12 = vcmp.le.f32.partialorder %v1382_v50, %v590_v59 }
 0x123   : > { %v624_v56 = vsel %vm623_vm9, %v607_v60, %v611_v62  ;;  %v626_v63 = vsel %vm625_vm10, %v609_v61, %v613_v1  ;;  %vm596_vm13 = vcmp.le.f32.partialorder %v1372_v42, %v590_v59  ;;  %vm598_vm14 = vcmp.le.f32.partialorder %v1384_v51, %v590_v59 }
 0x124   : > { %vm627_vm15 = vcmp.lt.s32.totalorder %v624_v56, %v615_v37  ;;  %vm629_vm0 = vcmp.lt.s32.totalorder %v626_v63, %v617_v47  ;;  %vm600_vm1 = vcmp.le.f32.partialorder %v1390_v58, %v590_v59  ;;  %vm602_vm2 = vcmp.le.f32.partialorder %v1393_v2, %v590_v59 }
 0x125   : > { %v628_v3 = vsel %vm627_vm15, %v624_v56, %v615_v37  ;;  %v630_v4 = vsel %vm629_vm0, %v626_v63, %v617_v47  ;;  %vm604_vm3 = vcmp.le.f32.partialorder %v1396_v17, %v590_v59  ;;  %vm606_vm4 = vcmp.le.f32.partialorder %v1399_v24, %v590_v59 }
 0x126   : > { %vm631_vm5 = vcmp.lt.s32.totalorder %v628_v3, %v619_v38  ;;  %vm633_vm6 = vcmp.lt.s32.totalorder %v630_v4, %v621_v48  ;;  %v608_v5 = vsel %vm592_vm11, %v1403_v35, 64  ;;  %v610_v9 = vsel %vm594_vm12, %v1406_v44, 64 }
 0x127   : > { %v632_v13 = vsel %vm631_vm5, %v628_v3, %v619_v38  ;;  %v634_v14 = vsel %vm633_vm6, %v630_v4, %v621_v48  ;;  %v612_v18 = vsel %vm596_vm13, %v1409_v46, 64  ;;  %v614_v19 = vsel %vm598_vm14, %v1412_v49, 64 }
 0x128   : > { %vm635_vm7 = vcmp.lt.s32.totalorder %v632_v13, %v634_v14  ;;  %v616_v40 = vsel %vm600_vm1, %v1415_v52, 64  ;;  %vm646_vm8 = vcmp.lt.s32.totalorder %v608_v5, %v612_v18  ;;  %vm648_vm9 = vcmp.lt.s32.totalorder %v610_v9, %v614_v19 }
 0x129   : > { %v636_v20 = vsel %vm635_vm7, %v632_v13, %v634_v14  ;;  %v618_v21 = vsel %vm602_vm2, %v1418_v54, 64  ;;  %v647_v22 = vsel %vm646_vm8, %v608_v5, %v612_v18  ;;  %v649_v42 = vsel %vm648_vm9, %v610_v9, %v614_v19 }
 0x12a   : > { %v637_v50 = vrot.slane %v636_v20, 4  ;;  %v620_v51 = vsel %vm604_vm3, %v1421_v55, 64  ;;  %vm650_vm10 = vcmp.lt.s32.totalorder %v647_v22, %v616_v40  ;;  %vm652_vm11 = vcmp.lt.s32.totalorder %v649_v42, %v618_v21 }
 0x12b   : > { %v622_v58 = vsel %vm606_vm4, %v1424_v57, 64  ;;  %v651_v23 = vsel %vm650_vm10, %v647_v22, %v616_v40  ;;  %v653_v25 = vsel %vm652_vm11, %v649_v42, %v618_v21  ;;  %v1473_v59 = vsub.s32 %v672_v41, %v1403_v35 }
 0x12c   : > { %vm638_vm12 = vcmp.lt.s32.totalorder %v636_v20, %v637_v50  ;;  %vm654_vm13 = vcmp.lt.s32.totalorder %v651_v23, %v620_v51  ;;  %vm656_vm14 = vcmp.lt.s32.totalorder %v653_v25, %v622_v58  ;;  %v1215_v60 = vmov 1.0|1.0  }
 0x12d   : > { %v639_v26 = vsel %vm638_vm12, %v636_v20, %v637_v50  ;;  %v655_v27 = vsel %vm654_vm13, %v651_v23, %v620_v51  ;;  %v657_v28 = vsel %vm656_vm14, %v653_v25, %v622_v58 }
 0x12e   : > { %v640_v2 = vrot.slane %v639_v26, 2  ;;  %vm658_vm15 = vcmp.lt.s32.totalorder %v655_v27, %v657_v28 }
 0x12f   : > { %v659_v29 = vsel %vm658_vm15, %v655_v27, %v657_v28 }
 0x130   : > { %vm641_vm0 = vcmp.lt.s32.totalorder %v639_v26, %v640_v2  ;;  %v660_v31 = vrot.slane %v659_v29, 4 }
 0x131   : > { %v642_v17 = vsel %vm641_vm0, %v639_v26, %v640_v2 }
 0x132   : > { %v643_v32 = vrot.slane %v642_v17, 1  ;;  %vm661_vm1 = vcmp.lt.s32.totalorder %v659_v29, %v660_v31 }
 0x133   : > { %v662_v33 = vsel %vm661_vm1, %v659_v29, %v660_v31 }
 0x134   : > { %v663_v24 = vrot.slane %v662_v33, 2  ;;  %vm644_vm2 = vcmp.lt.s32.totalorder %v642_v17, %v643_v32 }
 0x135   : > { %v645_v43 = vsel %vm644_vm2, %v642_v17, %v643_v32  ;;  %vm1491_vm2 = vcmp.lt.s32.totalorder %v556_v30, 256  ;;  %v350_v30 = vld [vmem:[%s1562_s2] sm:$0xff] }
 0x136   : > { %vm664_vm3 = vcmp.lt.s32.totalorder %v662_v33, %v663_v24  ;;  %vm689_vm5 = vcmp.eq.s32.totalorder %v1403_v35, %v645_v43  ;;  %vm691_vm6 = vcmp.eq.s32.totalorder %v1406_v44, %v645_v43  ;;  %vm693_vm14 = vcmp.eq.s32.totalorder %v1409_v46, %v645_v43 }
 0x137   : > { %v665_v39 = vsel %vm664_vm3, %v662_v33, %v663_v24  ;;  %vm1144_vm12 = vmpackc.low %vm691_vm6, %vm689_vm5  ;;  %vm695_vm15 = vcmp.eq.s32.totalorder %v1412_v49, %v645_v43  ;;  %vm697_vm5 = vcmp.eq.s32.totalorder %v1415_v52, %v645_v43  ;;  %vm699_vm6 = vcmp.eq.s32.totalorder %v1418_v54, %v645_v43 }
 0x138   : > { %v666_v45 = vrot.slane %v665_v39, 1  ;;  %vm1148_vm3 = vmpackc.low %vm695_vm15, %vm693_vm14  ;;  %vm737_vm14 = vcmask 523264  }
 0x13a   : > { %vm667_vm4 = vcmp.lt.s32.totalorder %v665_v39, %v666_v45 }
 0x13b   : > { %v668_v53 = vsel %vm667_vm4, %v665_v39, %v666_v45 }
 0x13c   : > { %vm690_vm7 = vcmp.eq.s32.totalorder %v1403_v35, %v668_v53  ;;  %vm692_vm8 = vcmp.eq.s32.totalorder %v1406_v44, %v668_v53  ;;  %vm694_vm9 = vcmp.eq.s32.totalorder %v1409_v46, %v668_v53  ;;  %vm696_vm10 = vcmp.eq.s32.totalorder %v1412_v49, %v668_v53  ;;  %v351_v49 = vld [vmem:[%s1562_s2 + $0x8] sm:$0xff] }
 0x13d   : > { %vm1142_vm11 = vmpackc.low %vm692_vm8, %vm690_vm7  ;;  %v669_v61 = vcombine.low %v645_v43, %v668_v53  ;;  %vm698_vm0 = vcmp.eq.s32.totalorder %v1415_v52, %v668_v53  ;;  %vm700_vm1 = vcmp.eq.s32.totalorder %v1418_v54, %v668_v53  ;;  %vm702_vm7 = vcmp.eq.s32.totalorder %v1421_v55, %v668_v53  ;;  %v352_v52 = vld [vmem:[%s1562_s2 + $0x10] sm:$0xff]  ;;  %v353_v54 = vld [vmem:[%s1562_s2 + $0x18] sm:$0xff] }
 0x13e   : > { %1143 = vmatprep.subr.msk.bf16.mxu1 %vm1142_vm11, %v1215_v60  ;;  %vm1146_vm13 = vmpackc.low %vm696_vm10, %vm694_vm9  ;;  %vm704_vm8 = vcmp.eq.s32.totalorder %v1424_v57, %v668_v53  ;;  %vm701_vm11 = vcmp.eq.s32.totalorder %v1421_v55, %v645_v43 }
 0x13f   : > { %1145 = vmatpush1.bf16.msk.msra.mxu1 %vm1144_vm12, %v1215_v60  ;;  %v676_v35 = vrot.slane %v669_v61, %v1473_v59  ;;  %vm1150_vm4 = vmpackc.low %vm700_vm1, %vm698_vm0  ;;  %vm703_vm12 = vcmp.eq.s32.totalorder %v1424_v57, %v645_v43 }
 0x140   : > { %1147 = vmatprep.subr.msk.bf16.mxu1 %vm1146_vm13, %v1215_v60  ;;  %vm1152_vm9 = vmpackc.low %vm699_vm6, %vm697_vm5 }
 0x141   : > { %v683_v46 = vrot.slane %v676_v35, %v1473_v59  ;;  %vm1154_vm10 = vmpackc.low %vm704_vm8, %vm702_vm7 }
 0x142   : > { %vm1156_vm13 = vmpackc.low %vm703_vm12, %vm701_vm11 }
 0x143   : > { %1149 = vmatpush1.bf16.msk.msra.mxu1 %vm1148_vm3, %v1215_v60  ;;  %688 = vst.msk [vmem:[%s313_s25] sm:$0x3] %vm1491_vm2, %v683_v46 }
 0x144   : > { %1151 = vmatprep.subr.msk.bf16.mxu1 %vm1150_vm4, %v1215_v60 }
 0x147   : > { %1153 = vmatpush1.bf16.msk.msra.mxu1 %vm1152_vm9, %v1215_v60 }
 0x148   : > { %1155 = vmatprep.subr.msk.bf16.mxu1 %vm1154_vm10, %v1215_v60 }
 0x14b   : > { %1157 = vmatpush1.bf16.msk.msra.mxu1 %vm1156_vm13, %v1215_v60 }
 0x14e   : > { %1126 = vmatmul.mubr.msk.f32.vlgmr.msra.gmra.mrb[0].mxu1 %vm737_vm14, %v350_v30 }
 0x14f   : > { %820 = vmatprep.mubr.f32.mxu1 %v1212_v0 }
 0x152   : > { %1127 = vmatmul.mubr.msk.f32.gmra.mrb[2].mxu1 %vm737_vm14, %v351_v49 }
 0x153   : > { %826 = vmatprep.mubr.f32.mxu1 %v1212_v0 }
 0x156   : > { %1128 = vmatmul.mubr.msk.f32.gmra.mrb[4].mxu1 %vm737_vm14, %v352_v52 }
 0x157   : > { %832 = vmatprep.mubr.f32.mxu1 %v1212_v0 }
 0x15a   : > { %1129 = vmatmul.mubr.msk.f32.gmra.mrb[6].mxu1 %vm737_vm14, %v353_v54 }
 0x221   : > { %v816_v55 = vpop.f32.mrb[0].mxu1 }
 0x222   : > { %839 = vst [vmem:[%s1524_s13] sm:$0xff] %v816_v55  ;;  %v818_v57 = vpop.f32.mrb[1].mxu1  ;;  %v847_v0 = vsub.f32 %v816_v55, %v1295_v8 }
 0x223   : > { %840 = vst [vmem:[%s1524_s13 + $0x8] sm:$0xff] %v818_v57  ;;  %v848_v62 = vsub.f32 %v818_v57, %v1291_v6 }
 0x224   : > { %v855_v48 = vmul.f32 %v847_v0, %v847_v0 }
 0x225   : > { %v822_v1 = vpop.f32.mrb[2].mxu1  ;;  %v856_v63 = vmul.f32 %v848_v62, %v848_v62 }
 0x226   : > { %841 = vst [vmem:[%s1524_s13 + $0x10] sm:$0xff] %v822_v1  ;;  %v849_v37 = vsub.f32 %v822_v1, %v1299_v10  ;;  %v824_v47 = vpop.f32.mrb[3].mxu1 }
 0x227   : > { %842 = vst [vmem:[%s1524_s13 + $0x18] sm:$0xff] %v824_v47  ;;  %v850_v38 = vsub.f32 %v824_v47, %v1293_v7 }
 0x228   : > { %v857_v56 = vmul.f32 %v849_v37, %v849_v37 }
 0x229   : > { %v858_v3 = vmul.f32 %v850_v38, %v850_v38  ;;  %v828_v4 = vpop.f32.mrb[4].mxu1 }
 0x22a   : > { %v863_v5 = vadd.f32 %v857_v56, %v855_v48  ;;  %843 = vst [vmem:[%s1524_s13 + $0x20] sm:$0xff] %v828_v4  ;;  %v851_v6 = vsub.f32 %v828_v4, %v1309_v15  ;;  %v830_v8 = vpop.f32.mrb[5].mxu1 }
 0x22b   : > { %v872_v9 = vadd.f32 %v858_v3, %v856_v63  ;;  %844 = vst [vmem:[%s1524_s13 + $0x28] sm:$0xff] %v830_v8  ;;  %v852_v10 = vsub.f32 %v830_v8, %v1301_v11 }
 0x22c   : > { %v859_v13 = vmul.f32 %v851_v6, %v851_v6 }
 0x22d   : > { %v860_v14 = vmul.f32 %v852_v10, %v852_v10  ;;  %v834_v18 = vpop.f32.mrb[6].mxu1 }
 0x22e   : > { %v864_v7 = vadd.f32 %v863_v5, %v859_v13  ;;  %845 = vst [vmem:[%s1524_s13 + $0x30] sm:$0xff] %v834_v18  ;;  %v853_v19 = vsub.f32 %v834_v18, %v1311_v16  ;;  %v836_v20 = vpop.f32.mrb[7].mxu1 }
 0x22f   : > { %v873_v40 = vadd.f32 %v872_v9, %v860_v14  ;;  %846 = vst [vmem:[%s1524_s13 + $0x38] sm:$0xff] %v836_v20  ;;  %v854_v50 = vsub.f32 %v836_v20, %v1303_v12 }
 0x230   : > { %v861_v21 = vmul.f32 %v853_v19, %v853_v19 }
 0x231   : > { %v862_v22 = vmul.f32 %v854_v50, %v854_v50 }
 0x232   : > { %v865_v15 = vadd.f32 %v864_v7, %v861_v21 }
 0x233   : > { %v874_v42 = vadd.f32 %v873_v40, %v862_v22 }
 0x234   : > { %v866_v51 = vrot.slane %v865_v15, 4 }
 0x235   : > { %v875_v58 = vrot.slane %v874_v42, 4 }
 0x236   : > { %v867_v11 = vadd.f32 %v866_v51, %v865_v15 }
 0x237   : > { %v876_v23 = vadd.f32 %v875_v58, %v874_v42 }
 0x238   : > { %v868_v25 = vrot.slane %v867_v11, 2 }
 0x239   : > { %v877_v26 = vrot.slane %v876_v23, 2 }
 0x23a   : > { %v869_v2 = vadd.f32 %v868_v25, %v867_v11 }
 0x23b   : > { %v878_v27 = vadd.f32 %v877_v26, %v876_v23 }
 0x23c   : > { %v870_v28 = vrot.slane %v869_v2, 1 }
 0x23d   : > { %v879_v16 = vrot.slane %v878_v27, 1 }
 0x23e   : > { %v871_v29 = vadd.f32 %v870_v28, %v869_v2 }
 0x23f   : > { %v880_v17 = vadd.f32 %v879_v16, %v878_v27 }
 0x241   : > { %v883_v31 = vcombine.low %v871_v29, %v880_v17 }
 0x243   : > { %v890_v12 = vrot.slane %v883_v31, %v1473_v59 }
 0x245   : > { %v897_v32 = vrot.slane %v890_v12, %v1473_v59 }
 0x247   : > { %899 = vst.msk [vmem:[%s332_s15] sm:$0x3] %vm1491_vm2, %v897_v32 }
 0x248 PF: > { %s17_s23 = sadd.s32 1, %s1210_s23   ;;  %s1569_s21 = smov %s1206_s22 }
 0x249   : > { %p14_p5 = scmp.ge.s32.totalorder %s17_s23, 4   ;;  %s1570_s22 = smov %s1572_s24 }
 0x24b   :  { %16 = sbr.rel (!%p14_p5) target bundleno = 2 (0x2), region = 90 }

</bundles_post_ra>
